<compile_context>
chip_gen: v6e
topology: v6e:2x2x1
jax: 0.10.0
libtpu: 0.0.40
codegen_flags: <defaults>
</compile_context>

<pallas_src>
import jax
import jax.numpy as jnp
from jax import lax
from jax.experimental import pallas as pl
from jax.experimental.pallas import tpu as pltpu


def _cdiv(a, b):
    return -(-a // b)


def _round_up(x, m):
    return ((x + m - 1) // m) * m


def _vmem_capacity_bytes():
    """Per-generation VMEM capacity (v5e/v6e: 128 MiB, v7x: 64 MiB)."""
    try:
        cap = int(pltpu.get_tpu_info().vmem_capacity_bytes)
        if cap > 0:
            return cap
    except Exception:
        pass
    return 64 * 1024 * 1024  # conservative fallback (v7x per-core)


def _vmem_budget():
    cap = _vmem_capacity_bytes()
    if cap >= 128 * 1024 * 1024:
        limit = 96 * 1024 * 1024                 # v5e / v6e
    else:
        limit = min(48 * 1024 * 1024, (cap * 3) // 4)   # v7x
    return limit, limit // 3                     # (vmem_limit, streamed-block budget)


def _choose_hw_tile(n, c, hw, dtype_bytes, block_budget_bytes, buffers=2,
                    max_tile=32 * 1024):
    """Largest HW tile (multiple of 128) whose `buffers` copies fit the budget."""
    per_lane = buffers * n * c * dtype_bytes
    tile = block_budget_bytes // max(per_lane, 1)
    tile = (tile // 128) * 128
    tile = max(tile, 128)                        # lane floor; vmem_limit is raised to cover it
    tile = min(tile, max_tile, _round_up(hw, 128))
    return int(tile)


def _make_reduce_kernel(n, c_in, tile, hw, k_steps, needs_mask):
    """Pass 1: lane-preserving partial spatial sums (one (N,C_in) partial per p)."""
    m = tile // 128

    def kernel(x_ref, part_ref, acc_ref):
        # x_ref:    (N, C_in, tile)   streamed input tile (auto double-buffered)
        # part_ref: (1, N, C_in)      this super-chunk's spatial-sum output (f32)
        # acc_ref:  (N, C_in, 128)    f32 lane-preserving accumulator (VMEM scratch)
        p = pl.program_id(0)
        k = pl.program_id(1)

        @pl.when(k == 0)
        def _():
            acc_ref[...] = jnp.zeros_like(acc_ref)

        base = (p * k_steps + k) * tile          # unclamped global element offset
        if needs_mask:
            lane = lax.broadcasted_iota(jnp.int32, (n, c_in, 128), 2)

        acc = acc_ref[...]
        for i in range(m):                       # static 128-lane chunks -> pure VALU adds
            chunk = x_ref[:, :, i * 128:(i + 1) * 128].astype(jnp.float32)
            if needs_mask:
                chunk = jnp.where(lane + (base + i * 128) < hw, chunk, 0.0)
            acc = acc + chunk
        acc_ref[...] = acc

        @pl.when(k == pl.num_programs(1) - 1)
        def _():
            # Single cross-lane reduce per super-chunk (epilogue only).
            part_ref[...] = jnp.sum(acc_ref[...], axis=-1)[None]

    return kernel


def _broadcast_kernel(part_ref, w_ref, shift_ref, o_ref, y_tile_ref):
    # part_ref:   (P1, N, C_in)        pass-1 partial sums (resident, loaded once)
    # w_ref:      (C_in, C_out)        1x1 conv weight with 1/HW and BN scale folded in
    # shift_ref:  (1, C_out)           BN shift
    # o_ref:      (N, C_out, tile)     lane-dense output tile
    # y_tile_ref: (N, C_out, tile)     broadcast result, computed once per core
    k = pl.program_id(1)

    @pl.when(k == 0)   # k == 0 runs on every core (k is the per-core inner axis)
    def _():
        pooled = jnp.sum(part_ref[...], axis=0)                      # (N, C_in) f32
        y = jnp.dot(pooled, w_ref[...], preferred_element_type=jnp.float32)
        y = y + shift_ref[...]                                       # BN shift
        y = y * jax.nn.sigmoid(y)                                    # SiLU
        y_tile_ref[...] = jnp.broadcast_to(
            y.astype(y_tile_ref.dtype)[:, :, None], y_tile_ref.shape)

    o_ref[...] = y_tile_ref[...]


def aspp_pooling(x, conv_weight, bn_gamma, bn_beta, bn_mean, bn_var, eps=1e-5):
    """x: (N, C_in, H, W) NCHW. conv_weight: (C_out, C_in, 1, 1). Returns (N, C_out, H, W)."""
    n, c_in, h, w = x.shape
    c_out = conv_weight.shape[0]
    hw = h * w
    out_dtype = x.dtype
    x_bytes = jnp.dtype(x.dtype).itemsize
    o_bytes = jnp.dtype(out_dtype).itemsize

    # Fold mean (1/HW) and the BN scale into the 1x1 conv weight; only the shift remains.
    scale = bn_gamma.astype(jnp.float32) / jnp.sqrt(bn_var.astype(jnp.float32) + eps)
    w_mat = (conv_weight.reshape(c_out, c_in).T.astype(jnp.float32)
             * (scale[None, :] / float(hw)))
    shift = (bn_beta.astype(jnp.float32) - bn_mean.astype(jnp.float32) * scale)[None, :]

    x_flat = x.reshape(n, c_in, hw)              # free reshape, no HBM copy
    vmem_limit, block_budget = _vmem_budget()

    # ---------------- pass 1: masked partial spatial sums (read x exactly once) ------------
    tile_in = _choose_hw_tile(n, c_in, hw, x_bytes, block_budget, buffers=2)
    n_tiles = _cdiv(hw, tile_in)
    p1 = 2 if n_tiles >= 2 else 1                # megacore split on v7x; harmless on 1-TC chips
    k1 = _cdiv(n_tiles, p1)
    needs_mask = (hw % tile_in != 0) or (p1 * k1 != n_tiles)

    if p1 * k1 == n_tiles:
        x_idx = lambda p, k: (0, 0, p * k1 + k)
    else:  # overhang steps re-read the last real tile; their contribution is masked to zero
        x_idx = lambda p, k: (0, 0, jnp.minimum(p * k1 + k, n_tiles - 1))

    pass1_need = 2 * n * c_in * tile_in * x_bytes + n * c_in * 128 * 4 + (2 << 20)
    partials = pl.pallas_call(
        _make_reduce_kernel(n, c_in, tile_in, hw, k1, needs_mask),
        out_shape=jax.ShapeDtypeStruct((p1, n, c_in), jnp.float32),
        grid_spec=pltpu.PrefetchScalarGridSpec(
            num_scalar_prefetch=0,
            grid=(p1, k1),
            in_specs=[pl.BlockSpec((n, c_in, tile_in), x_idx)],
            out_specs=pl.BlockSpec((1, n, c_in), lambda p, k: (p, 0, 0)),
            scratch_shapes=[pltpu.VMEM((n, c_in, 128), jnp.float32)],
        ),
        compiler_params=pltpu.CompilerParams(
            dimension_semantics=("parallel", "arbitrary"),
            vmem_limit_bytes=int(max(vmem_limit, pass1_need)),
        ),
        cost_estimate=pl.CostEstimate(
            flops=int(n * c_in * hw),
            transcendentals=0,
            bytes_accessed=int(n * c_in * hw * x_bytes + p1 * n * c_in * 4),
        ),
    )(x_flat)

    # ------------- pass 2: hoisted conv+BN+SiLU epilogue + lane-dense broadcast write -------
    tile_out = _choose_hw_tile(n, c_out, hw, o_bytes, block_budget, buffers=3)
    t_out = _cdiv(hw, tile_out)
    p2 = 2 if t_out >= 2 else 1
    k2 = _cdiv(t_out, p2)

    if p2 * k2 == t_out:
        o_idx = lambda p, k: (0, 0, p * k2 + k)
    else:  # overhang steps rewrite the last tile with identical data (benign)
        o_idx = lambda p, k: (0, 0, jnp.minimum(p * k2 + k, t_out - 1))

    pass2_need = 3 * n * c_out * tile_out * o_bytes + (2 << 20)
    out_flat = pl.pallas_call(
        _broadcast_kernel,
        out_shape=jax.ShapeDtypeStruct((n, c_out, hw), out_dtype),
        grid_spec=pltpu.PrefetchScalarGridSpec(
            num_scalar_prefetch=0,
            grid=(p2, k2),
            in_specs=[
                pl.BlockSpec((p1, n, c_in), lambda p, k: (0, 0, 0)),
                pl.BlockSpec((c_in, c_out), lambda p, k: (0, 0)),
                pl.BlockSpec((1, c_out), lambda p, k: (0, 0)),
            ],
            out_specs=pl.BlockSpec((n, c_out, tile_out), o_idx),
            scratch_shapes=[pltpu.VMEM((n, c_out, tile_out), out_dtype)],
        ),
        compiler_params=pltpu.CompilerParams(
            dimension_semantics=("parallel", "arbitrary"),
            vmem_limit_bytes=int(max(vmem_limit, pass2_need)),
        ),
        cost_estimate=pl.CostEstimate(
            flops=int(2 * n * c_in * c_out + 3 * n * c_out),
            transcendentals=int(n * c_out),
            bytes_accessed=int(n * c_out * hw * o_bytes
                               + p1 * n * c_in * 4 + c_in * c_out * 4),
        ),
    )(partials, w_mat, shift)

    return out_flat.reshape(n, c_out, h, w)


if __name__ == "__main__":
    key = jax.random.PRNGKey(0)
    k_x, k_w, k_g, k_b, k_m, k_v = jax.random.split(key, 6)

    N, C_IN, C_OUT, H, W = 2, 4, 8, 16, 16

    x = jax.random.normal(k_x, (N, C_IN, H, W), dtype=jnp.float32)

    # Conv2d(in_ch, out_ch, k=1, bias=False) weight: (C_OUT, C_IN, 1, 1)
    conv_weight = jax.random.normal(k_w, (C_OUT, C_IN, 1, 1), dtype=jnp.float32) * 0.1
    # BatchNorm2d(out_ch) parameters (eval-mode semantics with these stats).
    bn_gamma = jax.random.normal(k_g, (C_OUT,), dtype=jnp.float32) * 0.1 + 1.0
    bn_beta = jax.random.normal(k_b, (C_OUT,), dtype=jnp.float32) * 0.1
    bn_mean = jax.random.normal(k_m, (C_OUT,), dtype=jnp.float32) * 0.1
    bn_var = jax.nn.softplus(jax.random.normal(k_v, (C_OUT,), dtype=jnp.float32)) + 0.5

    out = aspp_pooling(x, conv_weight, bn_gamma, bn_beta, bn_mean, bn_var)
    out = jax.block_until_ready(out)

    # Pure-JAX reference check (mean -> 1x1 conv -> BN -> SiLU -> broadcast).
    pooled = x.mean(axis=(2, 3))                                      # (N, C_IN)
    y_ref = pooled @ conv_weight.reshape(C_OUT, C_IN).T               # (N, C_OUT)
    scale_ref = bn_gamma / jnp.sqrt(bn_var + 1e-5)
    y_ref = y_ref * scale_ref + (bn_beta - bn_mean * scale_ref)
    y_ref = y_ref * jax.nn.sigmoid(y_ref)
    ref = jnp.broadcast_to(y_ref[:, :, None, None], (N, C_OUT, H, W))
    assert jnp.allclose(out, ref, atol=1e-5, rtol=1e-5), "mismatch vs reference"

    print("KERNEL_OK")
</pallas_src>

<mosaic_0001>
module attributes {stable_mosaic.version = 11 : i64} {
  func.func @kernel(%arg0: i32, %arg1: i32, %arg2: memref<2x4x256xf32, #tpu.memory_space<vmem>>, %arg3: memref<1x2x4xf32, #tpu.memory_space<vmem>>, %arg4: memref<2x4x128xf32, #tpu.memory_space<vmem>>) attributes {dimension_semantics = [#tpu.dimension_semantics<parallel>, #tpu.dimension_semantics<arbitrary>], iteration_bounds = array<i64: 1, 1>, scalar_prefetch = 0 : i64, scratch_operands = 1 : i64, tpu.core_type = #tpu.core_type<tc>, window_params = [{transform_indices = @transform_0, window_bounds = array<i64: 2, 4, 256>}, {transform_indices = @transform_1, window_bounds = array<i64: 1, 2, 4>}]} {
    %c0_i32 = arith.constant 0 : i32
    %0 = arith.cmpi eq, %arg1, %c0_i32 : i32
    %1 = arith.extui %0 : i1 to i32
    %c0_i32_0 = arith.constant 0 : i32
    %2 = arith.cmpi ne, %1, %c0_i32_0 : i32
    scf.if %2 {
      %cst = arith.constant 0.000000e+00 : f32
      %12 = vector.broadcast %cst : f32 to vector<2x4x128xf32>
      %c0_13 = arith.constant 0 : index
      %c0_14 = arith.constant 0 : index
      %c0_15 = arith.constant 0 : index
      %13 = vector.load %arg4[%c0_13, %c0_14, %c0_15] : memref<2x4x128xf32, #tpu.memory_space<vmem>>, vector<2x4x128xf32>
      tpu.vector_store %arg4[%c0_13, %c0_14, %c0_15], %12 {strides = array<i32>} : memref<2x4x128xf32, #tpu.memory_space<vmem>>, vector<2x4x128xf32>,
    } else {
    }
    %c0 = arith.constant 0 : index
    %c0_1 = arith.constant 0 : index
    %c0_2 = arith.constant 0 : index
    %3 = vector.load %arg4[%c0, %c0_1, %c0_2] : memref<2x4x128xf32, #tpu.memory_space<vmem>>, vector<2x4x128xf32>
    %c0_3 = arith.constant 0 : index
    %c0_4 = arith.constant 0 : index
    %c0_5 = arith.constant 0 : index
    %4 = vector.load %arg2[%c0_3, %c0_4, %c0_5] : memref<2x4x256xf32, #tpu.memory_space<vmem>>, vector<2x4x128xf32>
    %5 = arith.addf %3, %4 : vector<2x4x128xf32>
    %c0_6 = arith.constant 0 : index
    %c0_7 = arith.constant 0 : index
    %c128 = arith.constant 128 : index
    %6 = vector.load %arg2[%c0_6, %c0_7, %c128] : memref<2x4x256xf32, #tpu.memory_space<vmem>>, vector<2x4x128xf32>
    %7 = arith.addf %5, %6 : vector<2x4x128xf32>
    %c0_8 = arith.constant 0 : index
    %c0_9 = arith.constant 0 : index
    %c0_10 = arith.constant 0 : index
    %8 = vector.load %arg4[%c0_8, %c0_9, %c0_10] : memref<2x4x128xf32, #tpu.memory_space<vmem>>, vector<2x4x128xf32>
    tpu.vector_store %arg4[%c0_8, %c0_9, %c0_10], %7 {strides = array<i32>} : memref<2x4x128xf32, #tpu.memory_space<vmem>>, vector<2x4x128xf32>,
    %c0_i32_11 = arith.constant 0 : i32
    %9 = arith.cmpi eq, %arg1, %c0_i32_11 : i32
    %10 = arith.extui %9 : i1 to i32
    %c0_i32_12 = arith.constant 0 : i32
    %11 = arith.cmpi ne, %10, %c0_i32_12 : i32
    scf.if %11 {
      %c0_13 = arith.constant 0 : index
      %c0_14 = arith.constant 0 : index
      %c0_15 = arith.constant 0 : index
      %12 = vector.load %arg4[%c0_13, %c0_14, %c0_15] : memref<2x4x128xf32, #tpu.memory_space<vmem>>, vector<2x4x128xf32>
      %cst = arith.constant dense<0.000000e+00> : vector<2x4xf32>
      %13 = vector.multi_reduction <add>, %12, %cst [2] : vector<2x4x128xf32> to vector<2x4xf32>
      %14 = vector.shape_cast %13 : vector<2x4xf32> to vector<1x2x4xf32>
      %c0_16 = arith.constant 0 : index
      %c0_17 = arith.constant 0 : index
      %c0_18 = arith.constant 0 : index
      %15 = vector.load %arg3[%c0_16, %c0_17, %c0_18] : memref<1x2x4xf32, #tpu.memory_space<vmem>>, vector<1x2x4xf32>
      tpu.vector_store %arg3[%c0_16, %c0_17, %c0_18], %14 {strides = array<i32>} : memref<1x2x4xf32, #tpu.memory_space<vmem>>, vector<1x2x4xf32>,
    } else {
    }
    return
  }
  func.func @transform_0(%arg0: i32, %arg1: i32) -> (i32, i32, i32) {
    %c1_i32 = arith.constant 1 : i32
    %0 = arith.muli %arg0, %c1_i32 : i32
    %1 = arith.addi %0, %arg1 : i32
    %c0_i32 = arith.constant 0 : i32
    %c0_i32_0 = arith.constant 0 : i32
    %c0_i32_1 = arith.constant 0 : i32
    return %c0_i32, %c0_i32_0, %1 : i32, i32, i32
  }
  func.func @transform_1(%arg0: i32, %arg1: i32) -> (i32, i32, i32) {
    %c0_i32 = arith.constant 0 : i32
    %c0_i32_0 = arith.constant 0 : i32
    %c0_i32_1 = arith.constant 0 : i32
    return %arg0, %c0_i32, %c0_i32_0 : i32, i32, i32
  }
}

</mosaic_0001>

<bundles_post_ra>
// kernel: tpu_custom_call.1
= control target key start
LH: loop header
LB: loop body
LE: loop exit
PB: predicated region body
PF: predicated region fallthrough
CT: control target
= control target key end

     0   :  { %6 = vsyncpa [#allocation4], 0  ;;  %s161_s0 = inlined_call_operand.hbm [shape: f32[2,4,256], index: 0, kind: input, shape index: {}]   ;;  %s162_s1 = inlined_call_operand.hbm [shape: f32[1,2,4], index: 1, kind: output, shape index: {}]  }
   0x1   :  { %7 = vsyncpa [#allocation5], 0  ;;  %s140_s6 = smov [#allocation3]  }
   0x2   :  { %s17_s7 = sshll.u32 %s140_s6, 4  ;;  %s18_s7 = int_to_ptr.vmem [resolvable:$true] %s17_s7 }
   0x3   :  { %s104_s8 = scalar_lea.vmem %s18_s7, 256  ;;  %p109_p1 = scmp.lt.s32.totalorder %s18_s7, %s18_s7 }
   0x4   :  { %p105_p0 = scmp.ne.s32.totalorder %s18_s7, %s104_s8  ;;  %p110_p2 = scmp.lt.s32.totalorder %s104_s8, %s104_s8 }
   0x6   :  { %p111_p3 = por %p110_p2, %p109_p1 }
   0x8   :  { %p112_p4 = pnand %p111_p3, %p105_p0 }
   0xa   :  { %115 = shalt.err (!%p112_p4)
}
   0xb   :  { %s141_s9 = smov 128   ;;  %s142_s10 = smov 8  }
   0xc   :  { %23 = dma.hbm_to_vmem [thread:$0]  %s161_s0, 256, %s18_s7, [#allocation4], %s141_s9, %s141_s9, %s142_s10  }
   0xd   :  { %136 = dma.done.wait [#allocation4], 256  }
   0xe   :  { %137 = vsyncadd [#allocation4], 4294967040  ;;  %v143_v0 = vmov 0.0   ;;  %v37_v1 = vld [vmem:[#allocation3] sm:$0xf]  ;;  %vm52_vm0 = vcmask 1043456   ;;  %v61_v15 = vlaneseq }
   0xf   :  { %33 = vst [vmem:[#allocation2] sm:$0xf] %v143_v0  ;;  %34 = vst [vmem:[#allocation2 + $0x4] sm:$0xf] %v143_v0  ;;  %v41_v2 = vld [vmem:[#allocation3 + $0x4] sm:$0xf] }
  0x10   :  { %v38_v3 = vld [vmem:[#allocation3 + $0x8] sm:$0xf]  ;;  %v42_v6 = vld [vmem:[#allocation3 + $0xc] sm:$0xf]  ;;  %v62_v16 = vand.u32 127, %v61_v15  ;;  %v64_v17 = vshrl.u32 %v61_v15, 7 }
  0x11   :  { %s144_s0 = smov [#allocation6]   ;;  %vm71_vm1 = vcmask 1041409   ;;  %vm74_vm2 = vcmask 25600  }
  0x12   :  { %v65_v19 = vsub.s32 %v62_v16, %v64_v17  ;;  %s82_s13 = sshll.u32 %s144_s0, 4  ;;  %s83_s13 = int_to_ptr.vmem [resolvable:$true] %s82_s13 }
  0x13   :  { %s116_s14 = scalar_lea.vmem %s83_s13, 32  ;;  %p121_p6 = scmp.lt.s32.totalorder %s83_s13, %s83_s13 }
  0x14   :  { %p117_p5 = scmp.ne.s32.totalorder %s83_s13, %s116_s14  ;;  %p122_p7 = scmp.lt.s32.totalorder %s116_s14, %s116_s14 }
  0x16   :  { %v35_v4 = vld [vmem:[#allocation2] sm:$0xf]  ;;  %v36_v5 = vld [vmem:[#allocation2 + $0x4] sm:$0xf]  ;;  %p123_p8 = por %p122_p7, %p121_p6 }
  0x17   :  { %v39_v7 = vadd.f32 %v37_v1, %v35_v4  ;;  %v40_v8 = vadd.f32 %v38_v3, %v36_v5 }
  0x18   :  { %p124_p9 = pnand %p123_p8, %p117_p5 }
  0x19   :  { %v43_v9 = vadd.f32 %v41_v2, %v39_v7  ;;  %v44_v10 = vadd.f32 %v42_v6, %v40_v8 }
  0x1b   :  { %45 = vst [vmem:[#allocation2] sm:$0xf] %v43_v9  ;;  %46 = vst [vmem:[#allocation2 + $0x4] sm:$0xf] %v44_v10 }
  0x22   :  { %v50_v11 = vld [vmem:[#allocation2] sm:$0xf]  ;;  %v51_v12 = vld [vmem:[#allocation2 + $0x4] sm:$0xf] }
  0x23   :  { %v53_v13 = vsel %vm52_vm0, %v50_v11, 0.0  ;;  %v56_v14 = vsel %vm52_vm0, %v51_v12, 0.0 }
  0x24   :  { %54 = vadd.xlane.f32.xlu0 %v53_v13 }
  0x28   :  { %57 = vadd.xlane.f32.xlu0 %v56_v14 }
  0xad   :  { %v55_v18 = vpop.xlane.xlu0 %54 }
  0xae   :  { %v66_v21 = vrot.slane %v55_v18, %v65_v19 }
  0xb1   :  { %v58_v20 = vpop.xlane.xlu0 %57 }
  0xb2   :  { %v70_v22 = vrot.slane %v58_v20, %v65_v19 }
  0xb4   :  { %v72_v23 = vsel %vm71_vm1, %v70_v22, %v66_v21 }
  0xb5   :  { %75 = vst.msk [vmem:[#allocation6] sm:$0x3] %vm74_vm2, %v72_v23 }
  0xb6   :  { %127 = shalt.err (!%p124_p9)
}
  0xb7   :  { %85 = dma.vmem_to_hbm [thread:$0]  %s83_s13, 32, %s162_s1, [#allocation5]  }
  0xb8   :  { %138 = dma.done.wait [#allocation5], 32  }
  0xb9   :  { %139 = vsyncadd [#allocation5], 4294967264 }
  0xba   :  { %89 = vsyncpa [#allocation4], 1 }
  0xbb   :  { %90 = vsyncpa [#allocation5], 1 }

</bundles_post_ra>
